<compile_context>
chip_gen: v7x
topology: tpu7x:2x2x1
jax: 0.10.0
libtpu: 0.0.40
codegen_flags: <defaults>
</compile_context>

<pallas_src>
import functools

import jax
import jax.numpy as jnp
from jax.experimental import pallas as pl
from jax.experimental.pallas import tpu as pltpu


def _round_up(v, m):
    return ((v + m - 1) // m) * m


def _fused_kernel(x_ref, gid_ref, w1_ref, b1_ref, w2_ref, b2_ref, out_ref, *, gate_col):
    """One node-tile of: relu(x@W1+b1) @ W2' + b2', sigmoid gate, per-graph segment sum.

    x:   [TN, F]    bf16 node features for this node tile
    gid: [1, TN]    int32 graph id per node (-1 for padding rows)
    w1:  [F, HP]    bf16,   b1: [1, HP] f32
    w2:  [HP, CP]   bf16 fused [linear2 | gate] weights,  b2: [1, CP] f32
    out: [1, G, CP] f32 resident per-graph accumulator (one slab per parallel split)
    """
    # Zero the resident accumulator on the first step of the reduction axis.
    @pl.when(pl.program_id(1) == 0)
    def _():
        out_ref[...] = jnp.zeros_like(out_ref)

    x = x_ref[...]                                                     # [TN, F] bf16

    # linear1 + ReLU (bf16 MXU operands, f32 accumulation; elementwise stays f32)
    h = jnp.dot(x, w1_ref[...], preferred_element_type=jnp.float32) + b1_ref[...]
    h = jnp.maximum(h, 0.0)                                            # [TN, HP] f32

    # fused linear2 + gate projection: column `gate_col` of f is the gate logit
    f = jnp.dot(h.astype(jnp.bfloat16), w2_ref[...],
                preferred_element_type=jnp.float32) + b2_ref[...]      # [TN, CP] f32

    # pull the gate-logit column via a lane-masked reduce (XLU); sigmoid on the EUP
    lane_iota = jax.lax.broadcasted_iota(jnp.int32, f.shape, 1)
    gate_logit = jnp.sum(jnp.where(lane_iota == gate_col, f, 0.0),
                         axis=1, keepdims=True)                        # [TN, 1]
    gate = jax.nn.sigmoid(gate_logit)
    weighted = gate * f                                                # [TN, CP] f32

    # segment-sum readout: per-tile membership mask built in VMEM from the graph ids
    gid = gid_ref[...]                                                 # [1, TN] int32
    num_graphs = out_ref.shape[1]
    g_iota = jax.lax.broadcasted_iota(jnp.int32, (num_graphs, gid.shape[1]), 0)
    mask = (gid == g_iota).astype(jnp.float32)                         # [G, TN]
    partial = jnp.dot(mask, weighted, preferred_element_type=jnp.float32)  # [G, CP]

    out_ref[...] += partial[None, :, :]


def model_forward(x, w1, b1, w2, b2, wg, bg, node_graph_id, num_graphs, *, block_rows=512):
    N, F = x.shape
    H = w1.shape[1]
    C = w2.shape[1]
    G = int(num_graphs)
    hi = jax.lax.Precision.HIGHEST

    # --- fold the gate projection (Linear(C, 1)) into linear2 ---
    w2g = jnp.dot(w2, wg, precision=hi)                  # [H, 1]
    b2g = jnp.dot(b2, wg, precision=hi) + bg             # [1, 1]
    w2f = jnp.concatenate([w2, w2g], axis=1)             # [H, C+1]
    b2f = jnp.concatenate([b2, b2g], axis=1)             # [1, C+1]

    # --- lane-dense zero padding of the hidden / output dims (multiples of 128) ---
    HP = _round_up(H, 128)
    CP = _round_up(C + 1, 128)
    w1p = jnp.pad(w1, ((0, 0), (0, HP - H))).astype(jnp.bfloat16)
    b1p = jnp.pad(b1, ((0, 0), (0, HP - H)))
    w2p = jnp.pad(w2f, ((0, HP - H), (0, CP - (C + 1)))).astype(jnp.bfloat16)
    b2p = jnp.pad(b2f, ((0, 0), (0, CP - (C + 1))))

    # --- node-axis tiling; 2-way node split feeds v7x's two TensorCores ---
    block_rows = max(128, _round_up(block_rows, 128))
    TN = min(block_rows, _round_up(N, 8))
    if N > TN:
        num_splits = 2
        N_pad = _round_up(N, TN * num_splits)
    else:
        num_splits = 1
        N_pad = TN
    tiles_per_split = N_pad // (TN * num_splits)

    xp = jnp.pad(x, ((0, N_pad - N), (0, 0))).astype(jnp.bfloat16)
    gid = jnp.pad(node_graph_id.astype(jnp.int32), (0, N_pad - N),
                  constant_values=-1)[None, :]                         # [1, N_pad]

    kernel = functools.partial(_fused_kernel, gate_col=C)

    out = pl.pallas_call(
        kernel,
        out_shape=jax.ShapeDtypeStruct((num_splits, G, CP), jnp.float32),
        grid=(num_splits, tiles_per_split),
        in_specs=[
            pl.BlockSpec((TN, F), lambda p, i: (p * tiles_per_split + i, 0)),
            pl.BlockSpec((1, TN), lambda p, i: (0, p * tiles_per_split + i)),
            pl.BlockSpec((F, HP), lambda p, i: (0, 0)),
            pl.BlockSpec((1, HP), lambda p, i: (0, 0)),
            pl.BlockSpec((HP, CP), lambda p, i: (0, 0)),
            pl.BlockSpec((1, CP), lambda p, i: (0, 0)),
        ],
        out_specs=pl.BlockSpec((1, G, CP), lambda p, i: (p, 0, 0)),
        compiler_params=pltpu.CompilerParams(
            dimension_semantics=("parallel", "arbitrary"),
            vmem_limit_bytes=48 << 20,
        ),
    )(xp, gid, w1p, b1p, w2p, b2p)

    # sum the per-split partial readouts and drop the gate / padding columns
    return jnp.sum(out, axis=0)[:, :C]


def reference_forward_f32(x, w1, b1, w2, b2, wg, bg, node_graph_id, num_graphs):
    hi = jax.lax.Precision.HIGHEST
    h = jnp.maximum(jnp.dot(x, w1, precision=hi) + b1, 0.0)
    h = jnp.dot(h, w2, precision=hi) + b2
    gate = jax.nn.sigmoid(jnp.dot(h, wg, precision=hi) + bg)
    seg = (node_graph_id[None, :] == jnp.arange(num_graphs)[:, None]).astype(jnp.float32)
    return jnp.dot(seg, gate * h, precision=hi)


def reference_forward_mixed(x, w1, b1, w2, b2, wg, bg, node_graph_id, num_graphs):
    # Mirrors the kernel's mixed precision (bf16 MXU operands, f32 accumulation).
    hi = jax.lax.Precision.HIGHEST
    w2g = jnp.dot(w2, wg, precision=hi)
    b2g = jnp.dot(b2, wg, precision=hi) + bg
    h = jnp.dot(x.astype(jnp.bfloat16), w1.astype(jnp.bfloat16),
                preferred_element_type=jnp.float32) + b1
    h = jnp.maximum(h, 0.0).astype(jnp.bfloat16)
    f = jnp.dot(h, w2.astype(jnp.bfloat16), preferred_element_type=jnp.float32) + b2
    gl = jnp.dot(h, w2g.astype(jnp.bfloat16), preferred_element_type=jnp.float32) + b2g
    gate = jax.nn.sigmoid(gl)
    seg = (node_graph_id[None, :] == jnp.arange(num_graphs)[:, None]).astype(jnp.float32)
    return jnp.dot(seg, gate * f, precision=hi)


if __name__ == "__main__":
    key = jax.random.PRNGKey(0)
    ks = jax.random.split(key, 8)

    # Small shapes consistent with the forward pass (stand-ins for BERT hidden sizes).
    N = 512   # total nodes across the batched graphs
    F = 32    # num_feats
    H = 64    # num_hidden
    C = 8     # class_num
    G = 2     # number of graphs in the batch

    x  = jax.random.normal(ks[0], (N, F), dtype=jnp.float32)
    w1 = jax.random.normal(ks[1], (F, H), dtype=jnp.float32) * 0.1
    b1 = jax.random.normal(ks[2], (1, H), dtype=jnp.float32) * 0.1
    w2 = jax.random.normal(ks[3], (H, C), dtype=jnp.float32) * 0.1
    b2 = jax.random.normal(ks[4], (1, C), dtype=jnp.float32) * 0.1
    wg = jax.random.normal(ks[5], (C, 1), dtype=jnp.float32) * 0.1
    bg = jax.random.normal(ks[6], (1, 1), dtype=jnp.float32) * 0.1

    # DGL-batched graphs have contiguous node ranges: first half -> graph 0, rest -> graph 1.
    node_graph_id = jnp.concatenate([jnp.zeros(N // 2, jnp.int32),
                                     jnp.ones(N - N // 2, jnp.int32)])

    out = model_forward(x, w1, b1, w2, b2, wg, bg, node_graph_id, G, block_rows=128)
    out = jax.block_until_ready(out)
    assert out.shape == (G, C)

    ref_mixed = reference_forward_mixed(x, w1, b1, w2, b2, wg, bg, node_graph_id, G)
    ref_f32 = reference_forward_f32(x, w1, b1, w2, b2, wg, bg, node_graph_id, G)

    # Tight check against a reference using the same mixed precision as the kernel.
    assert jnp.allclose(out, ref_mixed, atol=5e-3, rtol=5e-3), "mismatch vs mixed-precision ref"
    # Loose, scale-aware sanity check against the full-f32 reference (bf16 MXU operands).
    scale = jnp.maximum(1.0, jnp.max(jnp.abs(ref_f32)))
    assert jnp.max(jnp.abs(out - ref_f32)) <= 2e-2 * scale, "mismatch vs f32 reference"

    print("KERNEL_OK")
</pallas_src>

<mosaic_0001>
module attributes {stable_mosaic.version = 11 : i64} {
  func.func @_fused_kernel(%arg0: i32, %arg1: i32, %arg2: memref<128x32xbf16, #tpu.memory_space<vmem>>, %arg3: memref<1x128xi32, #tpu.memory_space<vmem>>, %arg4: memref<32x128xbf16, #tpu.memory_space<vmem>>, %arg5: memref<1x128xf32, #tpu.memory_space<vmem>>, %arg6: memref<128x128xbf16, #tpu.memory_space<vmem>>, %arg7: memref<1x128xf32, #tpu.memory_space<vmem>>, %arg8: memref<1x2x128xf32, #tpu.memory_space<vmem>>) attributes {dimension_semantics = [#tpu.dimension_semantics<parallel>, #tpu.dimension_semantics<arbitrary>], iteration_bounds = array<i64: 2, 2>, scalar_prefetch = 0 : i64, scratch_operands = 0 : i64, tpu.core_type = #tpu.core_type<tc>, window_params = [{transform_indices = @transform_0, window_bounds = array<i64: 128, 32>}, {transform_indices = @transform_1, window_bounds = array<i64: 1, 128>}, {pipeline_mode = #tpu.pipeline_mode<synchronous>, transform_indices = @transform_2, window_bounds = array<i64: 32, 128>}, {pipeline_mode = #tpu.pipeline_mode<synchronous>, transform_indices = @transform_3, window_bounds = array<i64: 1, 128>}, {pipeline_mode = #tpu.pipeline_mode<synchronous>, transform_indices = @transform_4, window_bounds = array<i64: 128, 128>}, {pipeline_mode = #tpu.pipeline_mode<synchronous>, transform_indices = @transform_5, window_bounds = array<i64: 1, 128>}, {transform_indices = @transform_6, window_bounds = array<i64: 1, 2, 128>}]} {
    %c0_i32 = arith.constant 0 : i32
    %0 = arith.cmpi eq, %arg1, %c0_i32 : i32
    %1 = arith.extui %0 : i1 to i32
    %c0_i32_0 = arith.constant 0 : i32
    %2 = arith.cmpi ne, %1, %c0_i32_0 : i32
    scf.if %2 {
      %cst_24 = arith.constant 0.000000e+00 : f32
      %42 = vector.broadcast %cst_24 : f32 to vector<1x2x128xf32>
      %c0_25 = arith.constant 0 : index
      %c0_26 = arith.constant 0 : index
      %c0_27 = arith.constant 0 : index
      %43 = vector.load %arg8[%c0_25, %c0_26, %c0_27] : memref<1x2x128xf32, #tpu.memory_space<vmem>>, vector<1x2x128xf32>
      tpu.vector_store %arg8[%c0_25, %c0_26, %c0_27], %42 {strides = array<i32>} : memref<1x2x128xf32, #tpu.memory_space<vmem>>, vector<1x2x128xf32>,
    } else {
    }
    %c0 = arith.constant 0 : index
    %c0_1 = arith.constant 0 : index
    %3 = vector.load %arg2[%c0, %c0_1] : memref<128x32xbf16, #tpu.memory_space<vmem>>, vector<128x32xbf16>
    %c0_2 = arith.constant 0 : index
    %c0_3 = arith.constant 0 : index
    %4 = vector.load %arg4[%c0_2, %c0_3] : memref<32x128xbf16, #tpu.memory_space<vmem>>, vector<32x128xbf16>
    %cst = arith.constant dense<0.000000e+00> : vector<128x128xf32>
    %5 = tpu.matmul %3, %4, %cst {dimension_numbers = #tpu.dot_dimension_numbers<[1], [0], [0], [1], [0, 0, 1, 1], [], []>} : vector<128x32xbf16>, vector<32x128xbf16>, vector<128x128xf32> -> vector<128x128xf32>
    %c0_4 = arith.constant 0 : index
    %c0_5 = arith.constant 0 : index
    %6 = vector.load %arg5[%c0_4, %c0_5] : memref<1x128xf32, #tpu.memory_space<vmem>>, vector<1x128xf32>
    %7 = vector.broadcast %6 : vector<1x128xf32> to vector<128x128xf32>
    %8 = arith.addf %5, %7 : vector<128x128xf32>
    %cst_6 = arith.constant 0.000000e+00 : f32
    %9 = vector.broadcast %cst_6 : f32 to vector<128x128xf32>
    %10 = arith.maximumf %8, %9 : vector<128x128xf32>
    %11 = arith.truncf %10 : vector<128x128xf32> to vector<128x128xbf16>
    %c0_7 = arith.constant 0 : index
    %c0_8 = arith.constant 0 : index
    %12 = vector.load %arg6[%c0_7, %c0_8] : memref<128x128xbf16, #tpu.memory_space<vmem>>, vector<128x128xbf16>
    %cst_9 = arith.constant dense<0.000000e+00> : vector<128x128xf32>
    %13 = tpu.matmul %11, %12, %cst_9 {dimension_numbers = #tpu.dot_dimension_numbers<[1], [0], [0], [1], [0, 0, 1, 1], [], []>} : vector<128x128xbf16>, vector<128x128xbf16>, vector<128x128xf32> -> vector<128x128xf32>
    %c0_10 = arith.constant 0 : index
    %c0_11 = arith.constant 0 : index
    %14 = vector.load %arg7[%c0_10, %c0_11] : memref<1x128xf32, #tpu.memory_space<vmem>>, vector<1x128xf32>
    %15 = vector.broadcast %14 : vector<1x128xf32> to vector<128x128xf32>
    %16 = arith.addf %13, %15 : vector<128x128xf32>
    %17 = tpu.iota {dimensions = array<i32: 1>} : vector<128x128xi32>
    %c8_i32 = arith.constant 8 : i32
    %18 = vector.broadcast %c8_i32 : i32 to vector<128x128xi32>
    %19 = arith.cmpi eq, %17, %18 : vector<128x128xi32>
    %cst_12 = arith.constant 0.000000e+00 : f32
    %20 = vector.broadcast %cst_12 : f32 to vector<128x128xf32>
    %21 = arith.select %19, %16, %20 : vector<128x128xi1>, vector<128x128xf32>
    %cst_13 = arith.constant dense<0.000000e+00> : vector<128xf32>
    %22 = vector.multi_reduction <add>, %21, %cst_13 [1] : vector<128x128xf32> to vector<128xf32>
    %23 = vector.shape_cast %22 : vector<128xf32> to vector<128x1xf32>
    %24 = arith.negf %23 : vector<128x1xf32>
    %25 = math.exp %24 : vector<128x1xf32>
    %cst_14 = arith.constant 1.000000e+00 : f32
    %26 = vector.broadcast %cst_14 : f32 to vector<128x1xf32>
    %27 = arith.addf %26, %25 : vector<128x1xf32>
    %28 = arith.divf %26, %27 : vector<128x1xf32>
    %29 = vector.broadcast %28 : vector<128x1xf32> to vector<128x128xf32>
    %30 = arith.mulf %29, %16 : vector<128x128xf32>
    %c0_15 = arith.constant 0 : index
    %c0_16 = arith.constant 0 : index
    %31 = vector.load %arg3[%c0_15, %c0_16] : memref<1x128xi32, #tpu.memory_space<vmem>>, vector<1x128xi32>
    %32 = tpu.iota {dimensions = array<i32: 0>} : vector<2x128xi32>
    %33 = vector.broadcast %31 : vector<1x128xi32> to vector<2x128xi32>
    %34 = arith.cmpi eq, %33, %32 : vector<2x128xi32>
    %35 = arith.extui %34 : vector<2x128xi1> to vector<2x128xi32>
    %36 = arith.sitofp %35 : vector<2x128xi32> to vector<2x128xf32>
    %cst_17 = arith.constant dense<0.000000e+00> : vector<2x128xf32>
    %37 = tpu.matmul %36, %30, %cst_17 {dimension_numbers = #tpu.dot_dimension_numbers<[1], [0], [0], [1], [0, 0, 1, 1], [], []>} : vector<2x128xf32>, vector<128x128xf32>, vector<2x128xf32> -> vector<2x128xf32>
    %c0_18 = arith.constant 0 : index
    %c0_19 = arith.constant 0 : index
    %c0_20 = arith.constant 0 : index
    %38 = vector.load %arg8[%c0_18, %c0_19, %c0_20] : memref<1x2x128xf32, #tpu.memory_space<vmem>>, vector<1x2x128xf32>
    %39 = vector.shape_cast %37 : vector<2x128xf32> to vector<1x2x128xf32>
    %40 = arith.addf %38, %39 : vector<1x2x128xf32>
    %c0_21 = arith.constant 0 : index
    %c0_22 = arith.constant 0 : index
    %c0_23 = arith.constant 0 : index
    %41 = vector.load %arg8[%c0_21, %c0_22, %c0_23] : memref<1x2x128xf32, #tpu.memory_space<vmem>>, vector<1x2x128xf32>
    tpu.vector_store %arg8[%c0_21, %c0_22, %c0_23], %40 {strides = array<i32>} : memref<1x2x128xf32, #tpu.memory_space<vmem>>, vector<1x2x128xf32>,
    return
  }
  func.func @transform_0(%arg0: i32, %arg1: i32) -> (i32, i32) {
    %c2_i32 = arith.constant 2 : i32
    %0 = arith.muli %arg0, %c2_i32 : i32
    %1 = arith.addi %0, %arg1 : i32
    %c0_i32 = arith.constant 0 : i32
    %c0_i32_0 = arith.constant 0 : i32
    return %1, %c0_i32 : i32, i32
  }
  func.func @transform_1(%arg0: i32, %arg1: i32) -> (i32, i32) {
    %c2_i32 = arith.constant 2 : i32
    %0 = arith.muli %arg0, %c2_i32 : i32
    %1 = arith.addi %0, %arg1 : i32
    %c0_i32 = arith.constant 0 : i32
    %c0_i32_0 = arith.constant 0 : i32
    return %c0_i32, %1 : i32, i32
  }
  func.func @transform_2(%arg0: i32, %arg1: i32) -> (i32, i32) {
    %c0_i32 = arith.constant 0 : i32
    %c0_i32_0 = arith.constant 0 : i32
    %c0_i32_1 = arith.constant 0 : i32
    return %c0_i32, %c0_i32_0 : i32, i32
  }
  func.func @transform_3(%arg0: i32, %arg1: i32) -> (i32, i32) {
    %c0_i32 = arith.constant 0 : i32
    %c0_i32_0 = arith.constant 0 : i32
    %c0_i32_1 = arith.constant 0 : i32
    return %c0_i32, %c0_i32_0 : i32, i32
  }
  func.func @transform_4(%arg0: i32, %arg1: i32) -> (i32, i32) {
    %c0_i32 = arith.constant 0 : i32
    %c0_i32_0 = arith.constant 0 : i32
    %c0_i32_1 = arith.constant 0 : i32
    return %c0_i32, %c0_i32_0 : i32, i32
  }
  func.func @transform_5(%arg0: i32, %arg1: i32) -> (i32, i32) {
    %c0_i32 = arith.constant 0 : i32
    %c0_i32_0 = arith.constant 0 : i32
    %c0_i32_1 = arith.constant 0 : i32
    return %c0_i32, %c0_i32_0 : i32, i32
  }
  func.func @transform_6(%arg0: i32, %arg1: i32) -> (i32, i32, i32) {
    %c0_i32 = arith.constant 0 : i32
    %c0_i32_0 = arith.constant 0 : i32
    %c0_i32_1 = arith.constant 0 : i32
    return %arg0, %c0_i32, %c0_i32_0 : i32, i32, i32
  }
}

</mosaic_0001>

<bundles_post_ra>
// kernel: tpu_custom_call.1
= control target key start
LH: loop header
LB: loop body
LE: loop exit
PB: predicated region body
PF: predicated region fallthrough
CT: control target
= control target key end

     0   :  { %11 = vsyncpa [#allocation3], 0  ;;  %s1876_s0 = inlined_call_operand.vmem [shape: bf16[512,32], index: 0, kind: input, shape index: {}]   ;;  %s1877_s1 = inlined_call_operand.vmem [shape: s32[1,512], index: 1, kind: input, shape index: {}]   ;;  %s1878_s2 = inlined_call_operand.vmem [shape: bf16[32,128], index: 2, kind: input, shape index: {}]   ;;  %s1879_s3 = inlined_call_operand.vmem [shape: f32[1,128], index: 3, kind: input, shape index: {}]   ;;  %s1880_s4 = inlined_call_operand.vmem [shape: bf16[128,128], index: 4, kind: input, shape index: {}]   ;;  %s1881_s5 = inlined_call_operand.vmem [shape: f32[1,128], index: 5, kind: input, shape index: {}]   ;;  %s1882_s6 = inlined_call_operand.hbm [shape: f32[2,2,128], index: 6, kind: output, shape index: {}]  }
   0x1   :  { %13 = vsyncpa [#allocation3 + $0x1], 0  ;;  %s1559_s21 = smov 0   ;;  %s1561_s22 = smov 0  }
   0x2   :  { %s1563_s23 = smov 0   ;;  %s1565_s24 = smov 0  }
   0x3   :  { %s1567_s25 = smov 0   ;;  %s1569_s26 = smov 0  }
   0x4   :  { %s1571_s27 = smov 0   ;;  %s1573_s28 = smov 0  }
   0x5 LB: > { %s1044_s29 = sadd.s32 4294967295, %s1516_s28   ;;  %s1045_s30 = sadd.s32 4294967294, %s1516_s28   ;;  %s1516_s28 = sphi %s1573_s28, %s19_s28   ;;  %s1512_s27 = sphi %s1571_s27, %s1896_s27   ;;  %s1508_s26 = sphi %s1569_s26, %s1895_s26   ;;  %s1504_s25 = sphi %s1567_s25, %s1894_s25   ;;  %s1500_s24 = sphi %s1565_s24, %s1893_s24   ;;  %s1496_s23 = sphi %s1563_s23, %s1892_s23   ;;  %s1492_s22 = sphi %s1561_s22, %s1891_s22   ;;  %s1488_s21 = sphi %s1559_s21, %s1890_s21  }
   0x6   : > { %s28_s7 = sadd.s32 1, %s1508_s26  ;;  %s31_s8 = sadd.s32 1, %s1512_s27 }
   0x7   : > { %p29_p0 = scmp.ge.s32.totalorder %s28_s7, 2  ;;  %p192_p1 = scmp.ne.s32.totalorder %s1496_s23, %s1492_s22 }
   0x8   : > { %p193_p2 = scmp.eq.s32.totalorder %s1044_s29, 3  ;;  %p198_p4 = scmp.ne.s32.totalorder %s1492_s22, %s1488_s21 }
   0x9   : > { %s1898_s7 = smov (%p29_p0, %s28_s7), 0  ;;  %s1900_s8 = smov (!%p29_p0, %s31_s8), %s1512_s27 }
   0xa   : > { %1884 = sst [smem:[#allocation5_spill]] %s1898_s7  ;;  %p1608_p3 = por %p193_p2, %p192_p1 }
   0xb   : > { %p33_p5 = scmp.ge.s32.totalorder %s1900_s8, 2  ;;  %p199_p6 = scmp.eq.s32.totalorder %s1045_s30, 3 }
   0xc   : > { %p1052_p7 = scmp.ge.s32.totalorder %s1516_s28, 1  ;;  %p252_p8 = scmp.lt.s32.totalorder %s1516_s28, 5 }
   0xd   : > { %s1902_s8 = smov (%p33_p5, %s1900_s8), 0  ;;  %p1618_p9 = por %p199_p6, %p198_p4 }
   0xe   : > { %1886 = sst [smem:[#allocation6_spill]] %s1902_s8  ;;  %p253_p10 = pnand %p1052_p7, %p252_p8 }
   0xf   : > { %s179_s11 = ssub.s32 %s1512_s27, %s1902_s8  ;;  %s182_s12 = sadd.s32 1, %s1496_s23 }
  0x10   : > { %p180_p11 = scmp.eq.s32.totalorder %s179_s11, 0  ;;  %256 = sbr.rel (%p253_p10) target bundleno = 914 (0x392), region = 44 }
  0x11   : > { %s286_s14 = sand.u32 (!%p253_p10), 1, %s1492_s22   ;;  %s1054_s15 = sshll.u32 (!%p253_p10), %s1504_s25, 1 }
  0x12   : > { %s1626_s13 = scalar_select %p180_p11, %s1496_s23, %s182_s12  }
  0x13   : > { %s1053_s16 = sshll.u32 (!%p253_p10), %s286_s14, 1  ;;  %s290_s17 = sadd.s32 (!%p253_p10), %s1500_s24, %s1054_s15 }
  0x14   : > { %s1055_s18 = sshll.u32 (!%p253_p10), %s290_s17, 4  ;;  %p301_p13 = scmp.lt.s32.totalorder (!%p253_p10), %s290_s17, 3 }
  0x15   : > { %p292_p12 = scmp.lt.s32.totalorder (!%p253_p10), %s1055_s18, 63  ;;  %s1644_s7 = scalar_lea.vmem (!%p253_p10), [#allocation2], %s1053_s16 }
  0x16   : > { %p1058_p0 = scmp.ne.s32.totalorder (!%p253_p10), %s1500_s24, 0 }
  0x17   : > { %s1904_s18 = smov (!%p292_p12, %s1055_s18), 63  ;;  %s1906_s17 = smov (!%p301_p13, %s290_s17), 3 }
  0x18   : > { %s1056_s19 = sshll.u32 %s1904_s18, 2  ;;  %s303_s8 = scalar_lea.vmem %s1877_s1, %s1906_s17  ;;  %v1518_v0 = vmov (!%p1058_p0), 0.0  }
  0x19   : > { %s1638_s30 = scalar_lea.vmem %s1876_s0, %s1056_s19  ;;  %310 = sbr.rel (%p1058_p0) target bundleno = 32 (0x20), region = 48  ;;  %311 = vst [vmem:[%s1644_s7] sm:$0x3] (!%p1058_p0), %v1518_v0 }
  0x20 PF: > { %v1340_v1 = vld [vmem:[%s1878_s2] sm:$0xff]   ;;  %v1341_v2 = vld [vmem:[%s1878_s2 + $0x8] sm:$0xff]   ;;  %vm391_vm0 = vcmask 261120   ;;  %v1344_v5 = vld [vmem:[%s1638_s30 + $0x10] sm:$0xff]   ;;  %vm1520_vm2 = vmmov 0   ;;  %s1107_s11 = sshll.u32 %s1504_s25, 5 }
  0x21   : > { %1153 = vmatprep.subr.bf16.mxu0 %v1340_v1  ;;  %v1342_v3 = vld [vmem:[%s1638_s30] sm:$0xff]   ;;  %v1343_v4 = vld [vmem:[%s1638_s30 + $0x8] sm:$0xff]   ;;  %v1345_v8 = vld [vmem:[%s1638_s30 + $0x18] sm:$0xff]   ;;  %s965_s12 = sshll.u32 %s1644_s7, 4  ;;  %s1820_s19 = scalar_lea.hbm %s1882_s6, %s1107_s11  ;;  %s1822_s12 = int_to_ptr.vmem [resolvable:$true] %s965_s12 }
  0x22   : > { %1154 = vmatpush3.bf16.msra.mxu0 %v1340_v1  ;;  %1157 = vmatprep.mubr.msk.bf16.mxu0 %vm391_vm0, %v1342_v3  ;;  %v1350_v6 = vld [vmem:[%s1880_s4] sm:$0xff]   ;;  %v1351_v7 = vld [vmem:[%s1880_s4 + $0x8] sm:$0xff]   ;;  %v1352_v9 = vld [vmem:[%s1880_s4 + $0x10] sm:$0xff]   ;;  %s1422_s17 = scalar_lea.vmem %s1822_s12, 32  ;;  %s1523_s25 = smov [#allocation2]  }
  0x23   : > { %1155 = vmatprep.subr.bf16.mxu0 %v1341_v2  ;;  %1173 = vmatprep.subr.bf16.mxu1 %v1350_v6  ;;  %v1346_v10 = vld [vmem:[%s1638_s30 + $0x20] sm:$0xff]   ;;  %v1353_v11 = vld [vmem:[%s1880_s4 + $0x18] sm:$0xff]   ;;  %v1347_v12 = vld [vmem:[%s1638_s30 + $0x28] sm:$0xff]   ;;  %p1423_p1 = scmp.ne.s32.totalorder %s1822_s12, %s1422_s17  ;;  %s1426_s20 = sshll.u32 %s1523_s25, 4  ;;  %s1427_s20 = int_to_ptr.vmem [resolvable:$false] %s1426_s20 }
  0x24   : > { %1174 = vmatpush3.bf16.msra.mxu1 %v1350_v6  ;;  %v1354_v13 = vld [vmem:[%s1880_s4 + $0x20] sm:$0xff]   ;;  %v1348_v14 = vld [vmem:[%s1638_s30 + $0x30] sm:$0xff]   ;;  %v1355_v15 = vld [vmem:[%s1880_s4 + $0x28] sm:$0xff]   ;;  %p1429_p5 = scmp.lt.s32.totalorder %s1822_s12, %s1427_s20 }
  0x25   : > { %1175 = vmatprep.subr.bf16.mxu1 %v1351_v7  ;;  %v1349_v16 = vld [vmem:[%s1638_s30 + $0x38] sm:$0xff]   ;;  %v1356_v17 = vld [vmem:[%s1880_s4 + $0x30] sm:$0xff]   ;;  %v1059_v19 = vld [vmem:[%s1879_s3] ss:$0 sm:$0xff]  ;;  %p1424_p2 = pnand %p1423_p1, %p1608_p3  ;;  %s1428_s30 = scalar_lea.vmem %s1427_s20, 64 }
  0x26   : > { %1156 = vmatpush3.bf16.msra.mxu0 %v1341_v2  ;;  %v1357_v18 = vld [vmem:[%s1880_s4 + $0x38] sm:$0xff]   ;;  %p1430_p6 = scmp.lt.s32.totalorder %s1428_s30, %s1422_s17 }
  0x27   : > { %p1425_p4 = pneg %p1424_p2 }
  0x28   : > { %1176 = vmatpush3.bf16.msra.mxu1 %v1351_v7  ;;  %p1431_p7 = por %p1430_p6, %p1429_p5 }
  0x29   : > { %1158 = vmatmul.mubr.msk.bf16.vlgmr.msra.gmra.mrb[0].mxu0 %vm391_vm0, %v1343_v4  ;;  %1177 = vmatprep.subr.bf16.mxu1 %v1352_v9 }
  0x2a   : > { %1161 = vmatprep.mubr.msk.bf16.mxu0 %vm391_vm0, %v1344_v5  ;;  %p1432_p8 = pnand %p1431_p7, %p1425_p4 }
  0x2c   : > { %1178 = vmatpush3.bf16.msra.mxu1 %v1352_v9 }
  0x2d   : > { %1179 = vmatprep.subr.bf16.mxu1 %v1353_v11 }
  0x30   : > { %1180 = vmatpush3.bf16.msra.mxu1 %v1353_v11 }
  0x31   : > { %1162 = vmatmul.mubr.msk.bf16.gmra.mrb[4].mxu0 %vm391_vm0, %v1345_v8  ;;  %1181 = vmatprep.subr.bf16.mxu1 %v1354_v13 }
  0x32   : > { %1165 = vmatprep.mubr.msk.bf16.mxu0 %vm391_vm0, %v1346_v10 }
  0x34   : > { %1182 = vmatpush3.bf16.msra.mxu1 %v1354_v13 }
  0x35   : > { %1183 = vmatprep.subr.bf16.mxu1 %v1355_v15 }
  0x38   : > { %1184 = vmatpush3.bf16.msra.mxu1 %v1355_v15 }
  0x39   : > { %1166 = vmatmul.mubr.msk.bf16.gmra.mrb[8].mxu0 %vm391_vm0, %v1347_v12  ;;  %1185 = vmatprep.subr.bf16.mxu1 %v1356_v17  ;;  %v705_v12 = vlaneseq }
  0x3a   : > { %1169 = vmatprep.mubr.msk.bf16.mxu0 %vm391_vm0, %v1348_v14  ;;  %v1078_v14 = vld [vmem:[%s1881_s5] ss:$0 sm:$0xff] }
  0x3b   : > { %v1698_v13 = vand.u32 127, %v705_v12 }
  0x3c   : > { %1186 = vmatpush3.bf16.msra.mxu1 %v1356_v17 }
  0x3d   : > { %1187 = vmatprep.subr.bf16.mxu1 %v1357_v18  ;;  %vm707_vm1 = vcmp.eq.s32.totalorder %v1698_v13, 8 }
  0x40   : > { %1188 = vmatpush3.bf16.msra.mxu1 %v1357_v18 }
  0x41   : > { %1170 = vmatmul.mubr.msk.bf16.gmra.mrb[12].mxu0 %vm391_vm0, %v1349_v16 }
  0xfc   : > { %v1159_v20 = vpop.f32.mrb[0].mxu0 }
  0xfd   : > { %v459_v21 = vadd.f32 %v1159_v20, %v1059_v19  ;;  %v450_v22 = vpop.f32.mrb[1].mxu0 }
  0xfe   : > { %v451_v23 = vadd.f32 %v1059_v19, %v450_v22  ;;  %v1160_v24 = vpop.f32.mrb[2].mxu0 }
  0xff   : > { %v462_v25 = vadd.f32 %v1160_v24, %v1059_v19  ;;  %v453_v26 = vpop.f32.mrb[3].mxu0  ;;  %v515_v28 = vmax.f32 %v459_v21, 0.0 }
 0x100   : > { %v454_v27 = vadd.f32 %v1059_v19, %v453_v26  ;;  %v513_v30 = vmax.f32 %v451_v23, 0.0 }
 0x101   : > { %v516_v29 = vmax.f32 %v462_v25, 0.0 }
 0x102   : > { %v514_v31 = vmax.f32 %v454_v27, 0.0 }
 0x103   : > { %v530_v32 = vpack.c.bf16 %v516_v29, %v515_v28 }
 0x104   : > { %v1163_v33 = vpop.f32.mrb[4].mxu0  ;;  %v529_v34 = vpack.c.bf16 %v514_v31, %v513_v30 }
 0x105   : > { %v475_v35 = vadd.f32 %v1163_v33, %v1059_v19  ;;  %v466_v36 = vpop.f32.mrb[5].mxu0 }
 0x106   : > { %v467_v37 = vadd.f32 %v1059_v19, %v466_v36  ;;  %v1164_v38 = vpop.f32.mrb[6].mxu0  ;;  %1189 = vmatprep.mubr.bf16.mxu1 %v529_v34 }
 0x107   : > { %v519_v39 = vmax.f32 %v475_v35, 0.0  ;;  %v478_v40 = vadd.f32 %v1164_v38, %v1059_v19  ;;  %v469_v41 = vpop.f32.mrb[7].mxu0  ;;  %1190 = vmatmul.mubr.bf16.vlgmr.msra.gmra.mrb[0].mxu1 %v530_v32 }
 0x108   : > { %v517_v42 = vmax.f32 %v467_v37, 0.0  ;;  %v470_v43 = vadd.f32 %v1059_v19, %v469_v41 }
 0x109   : > { %v520_v44 = vmax.f32 %v478_v40, 0.0 }
 0x10a   : > { %v518_v45 = vmax.f32 %v470_v43, 0.0 }
 0x10b   : > { %v532_v46 = vpack.c.bf16 %v520_v44, %v519_v39 }
 0x10c   : > { %v531_v47 = vpack.c.bf16 %v518_v45, %v517_v42  ;;  %v1167_v48 = vpop.f32.mrb[8].mxu0 }
 0x10d   : > { %v491_v49 = vadd.f32 %v1167_v48, %v1059_v19  ;;  %v482_v50 = vpop.f32.mrb[9].mxu0 }
 0x10e   : > { %v483_v51 = vadd.f32 %v1059_v19, %v482_v50  ;;  %v1168_v52 = vpop.f32.mrb[10].mxu0  ;;  %1193 = vmatprep.mubr.bf16.mxu1 %v531_v47 }
 0x10f   : > { %v523_v53 = vmax.f32 %v491_v49, 0.0  ;;  %v494_v54 = vadd.f32 %v1168_v52, %v1059_v19  ;;  %v485_v55 = vpop.f32.mrb[11].mxu0  ;;  %1194 = vmatmul.mubr.bf16.gmra.mrb[4].mxu1 %v532_v46 }
 0x110   : > { %v521_v56 = vmax.f32 %v483_v51, 0.0  ;;  %v486_v57 = vadd.f32 %v1059_v19, %v485_v55 }
 0x111   : > { %v524_v58 = vmax.f32 %v494_v54, 0.0 }
 0x112   : > { %v522_v59 = vmax.f32 %v486_v57, 0.0 }
 0x113   : > { %v534_v60 = vpack.c.bf16 %v524_v58, %v523_v53 }
 0x114   : > { %v533_v61 = vpack.c.bf16 %v522_v59, %v521_v56  ;;  %v1171_v62 = vpop.f32.mrb[12].mxu0 }
 0x115   : > { %v507_v63 = vadd.f32 %v1171_v62, %v1059_v19  ;;  %v498_v0 = vpop.f32.mrb[13].mxu0 }
 0x116   : > { %v499_v1 = vadd.f32 %v1059_v19, %v498_v0  ;;  %v1172_v2 = vpop.f32.mrb[14].mxu0  ;;  %1197 = vmatprep.mubr.bf16.mxu1 %v533_v61  ;;  %v1521_v0 = vmov 0.0  }
 0x117   : > { %v527_v3 = vmax.f32 %v507_v63, 0.0  ;;  %v510_v4 = vadd.f32 %v1172_v2, %v1059_v19  ;;  %v501_v5 = vpop.f32.mrb[15].mxu0  ;;  %1198 = vmatmul.mubr.bf16.gmra.mrb[8].mxu1 %v534_v60  ;;  %v1519_v63 = vmov 0.0|0.0   ;;  %1237 = vmatprep.mubr.msk.f32.mxu0 %vm1520_vm2, %v1521_v0 }
 0x118   : > { %v525_v6 = vmax.f32 %v499_v1, 0.0  ;;  %v502_v7 = vadd.f32 %v1059_v19, %v501_v5  ;;  %1240 = vmatprep.subr.bf16.mxu0 %v1519_v63 }
 0x119   : > { %v528_v8 = vmax.f32 %v510_v4, 0.0 }
 0x11a   : > { %v526_v9 = vmax.f32 %v502_v7, 0.0 }
 0x11b   : > { %v536_v10 = vpack.c.bf16 %v528_v8, %v527_v3 }
 0x11c   : > { %v535_v11 = vpack.c.bf16 %v526_v9, %v525_v6 }
 0x11e   : > { %1201 = vmatprep.mubr.bf16.mxu1 %v535_v11 }
 0x11f   : > { %1202 = vmatmul.mubr.bf16.gmra.mrb[12].mxu1 %v536_v10 }
 0x1da   : > { %v1191_v15 = vpop.f32.mrb[0].mxu1 }
 0x1db   : > { %v1704_v16 = vadd.f32 %v1191_v15, %v1078_v14  ;;  %v642_v17 = vpop.f32.mrb[1].mxu1 }
 0x1dc   : > { %v1706_v18 = vadd.f32 %v1078_v14, %v642_v17  ;;  %v1192_v19 = vpop.f32.mrb[2].mxu1 }
 0x1dd   : > { %v1708_v20 = vadd.f32 %v1192_v19, %v1078_v14  ;;  %v645_v21 = vpop.f32.mrb[3].mxu1  ;;  %v710_v22 = vsel %vm707_vm1, %v1704_v16, 0.0 }
 0x1de   : > { %v1713_v23 = vadd.f32 %v1078_v14, %v645_v21  ;;  %728 = vadd.xlane.f32.xlu1 %v710_v22  ;;  %v708_v24 = vsel %vm707_vm1, %v1706_v18, 0.0 }
 0x1df   : > { %724 = vadd.xlane.f32.xlu0 %v708_v24  ;;  %v711_v25 = vsel %vm707_vm1, %v1708_v20, 0.0 }
 0x1e0   : > { %v709_v27 = vsel %vm707_vm1, %v1713_v23, 0.0 }
 0x1e2   : > { %730 = vadd.xlane.f32.xlu1 %v711_v25  ;;  %v1195_v26 = vpop.f32.mrb[4].mxu1 }
 0x1e3   : > { %v658_v28 = vpop.f32.mrb[5].mxu1  ;;  %726 = vadd.xlane.f32.xlu0 %v709_v27  ;;  %v1726_v32 = vadd.f32 %v1195_v26, %v1078_v14 }
 0x1e4   : > { %v1724_v29 = vadd.f32 %v1078_v14, %v658_v28  ;;  %v1196_v30 = vpop.f32.mrb[6].mxu1 }
 0x1e5   : > { %v661_v31 = vpop.f32.mrb[7].mxu1  ;;  %v1733_v35 = vadd.f32 %v1196_v30, %v1078_v14  ;;  %v714_v38 = vsel %vm707_vm1, %v1726_v32, 0.0 }
 0x1e6   : > { %v1728_v33 = vadd.f32 %v1078_v14, %v661_v31  ;;  %v712_v34 = vsel %vm707_vm1, %v1724_v29, 0.0 }
 0x1e7   : > { %732 = vadd.xlane.f32.xlu0 %v712_v34  ;;  %v715_v42 = vsel %vm707_vm1, %v1733_v35, 0.0 }
 0x1e8   : > { %v713_v36 = vsel %vm707_vm1, %v1728_v33, 0.0 }
 0x1e9   : > { %734 = vadd.xlane.f32.xlu1 %v713_v36 }
 0x1ea   : > { %v1199_v37 = vpop.f32.mrb[8].mxu1 }
 0x1eb   : > { %v674_v39 = vpop.f32.mrb[9].mxu1  ;;  %736 = vadd.xlane.f32.xlu0 %v714_v38  ;;  %v1746_v44 = vadd.f32 %v1199_v37, %v1078_v14 }
 0x1ec   : > { %v1741_v40 = vadd.f32 %v1078_v14, %v674_v39  ;;  %v1200_v41 = vpop.f32.mrb[10].mxu1 }
 0x1ed   : > { %v677_v43 = vpop.f32.mrb[11].mxu1  ;;  %738 = vadd.xlane.f32.xlu1 %v715_v42  ;;  %v1753_v47 = vadd.f32 %v1200_v41, %v1078_v14  ;;  %v718_v50 = vsel %vm707_vm1, %v1746_v44, 0.0 }
 0x1ee   : > { %v1748_v45 = vadd.f32 %v1078_v14, %v677_v43  ;;  %v716_v46 = vsel %vm707_vm1, %v1741_v40, 0.0 }
 0x1ef   : > { %740 = vadd.xlane.f32.xlu0 %v716_v46  ;;  %v719_v54 = vsel %vm707_vm1, %v1753_v47, 0.0 }
 0x1f0   : > { %v717_v48 = vsel %vm707_vm1, %v1748_v45, 0.0 }
 0x1f1   : > { %742 = vadd.xlane.f32.xlu1 %v717_v48 }
 0x1f2   : > { %v1203_v49 = vpop.f32.mrb[12].mxu1 }
 0x1f3   : > { %v690_v51 = vpop.f32.mrb[13].mxu1  ;;  %744 = vadd.xlane.f32.xlu0 %v718_v50  ;;  %v1766_v56 = vadd.f32 %v1203_v49, %v1078_v14 }
 0x1f4   : > { %v1761_v52 = vadd.f32 %v1078_v14, %v690_v51  ;;  %v1204_v53 = vpop.f32.mrb[14].mxu1 }
 0x1f5   : > { %v693_v55 = vpop.f32.mrb[15].mxu1  ;;  %746 = vadd.xlane.f32.xlu1 %v719_v54  ;;  %v1773_v59 = vadd.f32 %v1204_v53, %v1078_v14  ;;  %v722_v61 = vsel %vm707_vm1, %v1766_v56, 0.0 }
 0x1f6   : > { %v1768_v57 = vadd.f32 %v1078_v14, %v693_v55  ;;  %v720_v58 = vsel %vm707_vm1, %v1761_v52, 0.0 }
 0x1f7   : > { %748 = vadd.xlane.f32.xlu0 %v720_v58  ;;  %v723_v62 = vsel %vm707_vm1, %v1773_v59, 0.0 }
 0x1f8   : > { %v721_v60 = vsel %vm707_vm1, %v1768_v57, 0.0 }
 0x1f9   : > { %750 = vadd.xlane.f32.xlu1 %v721_v60 }
 0x1fb   : > { %752 = vadd.xlane.f32.xlu0 %v722_v61 }
 0x1fd   : > { %754 = vadd.xlane.f32.xlu1 %v723_v62 }
 0x26b   : > { %v729_v1 = vpop.xlane.xlu1 %728 }
 0x26c   : > { %v1089_v2 = vmul.f32 -1.442695, %v729_v1  ;;  %v725_v3 = vpop.xlane.xlu0 %724 }
 0x26d   : > { %v1087_v4 = vmul.f32 -1.442695, %v725_v3 }
 0x26e   : > { %1358 = vpow2.f32 %v1089_v2 }
 0x26f   : > { %1360 = vpow2.f32 %v1087_v4  ;;  %v731_v5 = vpop.xlane.xlu1 %730 }
 0x270   : > { %v1090_v6 = vmul.f32 -1.442695, %v731_v5  ;;  %v727_v7 = vpop.xlane.xlu0 %726 }
 0x271   : > { %v1088_v8 = vmul.f32 -1.442695, %v727_v7 }
 0x272   : > { %1362 = vpow2.f32 %v1090_v6 }
 0x273   : > { %1364 = vpow2.f32 %v1088_v8 }
 0x274   : > { %v733_v9 = vpop.xlane.xlu0 %732 }
 0x275   : > { %v1091_v10 = vmul.f32 -1.442695, %v733_v9 }
 0x276   : > { %v735_v11 = vpop.xlane.xlu1 %734 }
 0x277   : > { %1366 = vpow2.f32 %v1091_v10  ;;  %v1092_v13 = vmul.f32 -1.442695, %v735_v11 }
 0x278   : > { %v1359_v14 = vpop.eup %1358  ;;  %v737_v15 = vpop.xlane.xlu0 %736 }
 0x279   : > { %v1361_v17 = vpop.eup %1360  ;;  %v806_v19 = vadd.f32 1.0, %v1359_v14  ;;  %1368 = vpow2.f32 %v1092_v13  ;;  %v1093_v21 = vmul.f32 -1.442695, %v737_v15 }
 0x27a   : > { %v804_v22 = vadd.f32 1.0, %v1361_v17  ;;  %v739_v24 = vpop.xlane.xlu1 %738 }
 0x27b   : > { %1370 = vrcp.f32 %v806_v19  ;;  %v1094_v25 = vmul.f32 -1.442695, %v739_v24 }
 0x27c   : > { %v1363_v26 = vpop.eup %1362  ;;  %1372 = vrcp.f32 %v804_v22  ;;  %v741_v27 = vpop.xlane.xlu0 %740 }
 0x27d   : > { %v1365_v28 = vpop.eup %1364  ;;  %v807_v30 = vadd.f32 1.0, %v1363_v26  ;;  %1374 = vpow2.f32 %v1093_v21  ;;  %v1095_v31 = vmul.f32 -1.442695, %v741_v27 }
 0x27e   : > { %v805_v34 = vadd.f32 1.0, %v1365_v28  ;;  %1376 = vpow2.f32 %v1094_v25  ;;  %v743_v36 = vpop.xlane.xlu1 %742 }
 0x27f   : > { %1378 = vrcp.f32 %v807_v30  ;;  %v1096_v37 = vmul.f32 -1.442695, %v743_v36 }
 0x280   : > { %1380 = vrcp.f32 %v805_v34  ;;  %v745_v38 = vpop.xlane.xlu0 %744 }
 0x281   : > { %v1367_v39 = vpop.eup %1366  ;;  %1382 = vpow2.f32 %v1095_v31  ;;  %v1097_v41 = vmul.f32 -1.442695, %v745_v38 }
 0x282   : > { %v808_v42 = vadd.f32 1.0, %v1367_v39  ;;  %1384 = vpow2.f32 %v1096_v37  ;;  %v747_v43 = vpop.xlane.xlu1 %746 }
 0x283   : > { %v1369_v46 = vpop.eup %1368  ;;  %1386 = vpow2.f32 %v1097_v41  ;;  %v1098_v48 = vmul.f32 -1.442695, %v747_v43 }
 0x284   : > { %1388 = vrcp.f32 %v808_v42  ;;  %v809_v49 = vadd.f32 1.0, %v1369_v46  ;;  %v749_v50 = vpop.xlane.xlu0 %748 }
 0x285   : > { %v1371_v51 = vpop.eup %1370  ;;  %1390 = vpow2.f32 %v1098_v48  ;;  %v1099_v53 = vmul.f32 -1.442695, %v749_v50 }
 0x286   : > { %v1373_v54 = vpop.eup %1372  ;;  %1392 = vrcp.f32 %v809_v49  ;;  %v751_v55 = vpop.xlane.xlu1 %750  ;;  %v854_v24 = vmul.f32 %v1371_v51, %v1704_v16 }
 0x287   : > { %v1375_v58 = vpop.eup %1374  ;;  %1394 = vpow2.f32 %v1099_v53  ;;  %v1100_v60 = vmul.f32 -1.442695, %v751_v55  ;;  %v852_v8 = vmul.f32 %v1373_v54, %v1706_v18 }
 0x288   : > { %v1377_v61 = vpop.eup %1376  ;;  %v810_v62 = vadd.f32 1.0, %v1375_v58  ;;  %v753_v0 = vpop.xlane.xlu0 %752 }
 0x289   : > { %v1379_v1 = vpop.eup %1378  ;;  %v811_v2 = vadd.f32 1.0, %v1377_v61  ;;  %1396 = vpow2.f32 %v1100_v60  ;;  %v1101_v3 = vmul.f32 -1.442695, %v753_v0  ;;  %v870_v0 = vshrl.u32 %v705_v12, 7 }
 0x28a   : > { %v1381_v4 = vpop.eup %1380  ;;  %1398 = vrcp.f32 %v810_v62  ;;  %v755_v5 = vpop.xlane.xlu1 %754  ;;  %v855_v17 = vmul.f32 %v1379_v1, %v1708_v20  ;;  %v1522_v1 = vmov 1.0  }
 0x28b   : > { %v1383_v6 = vpop.eup %1382  ;;  %1400 = vrcp.f32 %v811_v2  ;;  %v1102_v7 = vmul.f32 -1.442695, %v755_v5  ;;  %v853_v9 = vmul.f32 %v1381_v4, %v1713_v23 }
 0x28c   : > { %v1385_v10 = vpop.eup %1384  ;;  %v812_v11 = vadd.f32 1.0, %v1383_v6  ;;  %1402 = vpow2.f32 %v1101_v3  ;;  %v1244_v26 = vpack.c.bf16 %v855_v17, %v854_v24 }
 0x28d   : > { %v1387_v13 = vpop.eup %1386  ;;  %v813_v14 = vadd.f32 1.0, %v1385_v10  ;;  %1404 = vpow2.f32 %v1102_v7  ;;  %v1241_v15 = vpack.c.bf16 %v853_v9, %v852_v8 }
 0x28e   : > { %v1389_v19 = vpop.eup %1388  ;;  %1406 = vrcp.f32 %v812_v11  ;;  %v814_v21 = vadd.f32 1.0, %v1387_v13 }
 0x28f   : > { %v1391_v22 = vpop.eup %1390  ;;  %1408 = vrcp.f32 %v813_v14  ;;  %1242 = vmatpush3.bf16.msra.mxu0 %v1241_v15  ;;  %v856_v30 = vmul.f32 %v1389_v19, %v1724_v29 }
 0x290   : > { %v1393_v18 = vpop.eup %1392  ;;  %v815_v25 = vadd.f32 1.0, %v1391_v22  ;;  %1243 = vmatprep.subr.bf16.mxu0 %v1519_v63  ;;  %1410 = vrcp.f32 %v814_v21 }
 0x291   : > { %v1395_v23 = vpop.eup %1394  ;;  %v857_v27 = vmul.f32 %v1393_v18, %v1728_v33 }
 0x292   : > { %1412 = vrcp.f32 %v815_v25  ;;  %v816_v28 = vadd.f32 1.0, %v1395_v23 }
 0x293   : > { %v1397_v20 = vpop.eup %1396  ;;  %1245 = vmatpush3.bf16.msra.mxu0 %v1244_v26  ;;  %v1247_v36 = vpack.c.bf16 %v857_v27, %v856_v30 }
 0x294   : > { %v1399_v31 = vpop.eup %1398  ;;  %v817_v34 = vadd.f32 1.0, %v1397_v20  ;;  %1246 = vmatprep.subr.bf16.mxu0 %v1519_v63  ;;  %1414 = vrcp.f32 %v816_v28 }
 0x295   : > { %v1401_v16 = vpop.eup %1400  ;;  %v858_v33 = vmul.f32 %v1399_v31, %v1726_v32 }
 0x296   : > { %v1403_v37 = vpop.eup %1402  ;;  %1416 = vrcp.f32 %v817_v34  ;;  %v859_v38 = vmul.f32 %v1401_v16, %v1733_v35 }
 0x297   : > { %v1405_v39 = vpop.eup %1404  ;;  %v818_v41 = vadd.f32 1.0, %v1403_v37  ;;  %1248 = vmatpush3.bf16.msra.mxu0 %v1247_v36 }
 0x298   : > { %v1407_v42 = vpop.eup %1406  ;;  %v819_v43 = vadd.f32 1.0, %v1405_v39  ;;  %1249 = vmatprep.subr.bf16.mxu0 %v1519_v63  ;;  %v1250_v46 = vpack.c.bf16 %v859_v38, %v858_v33 }
 0x299   : > { %v1409_v29 = vpop.eup %1408  ;;  %1418 = vrcp.f32 %v818_v41  ;;  %v860_v50 = vmul.f32 %v1407_v42, %v1741_v40 }
 0x29a   : > { %1420 = vrcp.f32 %v819_v43  ;;  %v861_v48 = vmul.f32 %v1409_v29, %v1748_v45  ;;  %v1411_v49 = vpop.eup %1410 }
 0x29b   : > { %1251 = vmatpush3.bf16.msra.mxu0 %v1250_v46  ;;  %v862_v54 = vmul.f32 %v1411_v49, %v1746_v44 }
 0x29c   : > { %v1413_v35 = vpop.eup %1412  ;;  %1252 = vmatprep.subr.bf16.mxu0 %v1519_v63  ;;  %v1253_v51 = vpack.c.bf16 %v861_v48, %v860_v50 }
 0x29d   : > { %v863_v32 = vmul.f32 %v1413_v35, %v1753_v47 }
 0x29e   : > { %v1415_v53 = vpop.eup %1414 }
 0x29f   : > { %1254 = vmatpush3.bf16.msra.mxu0 %v1253_v51  ;;  %v1256_v58 = vpack.c.bf16 %v863_v32, %v862_v54  ;;  %v864_v40 = vmul.f32 %v1415_v53, %v1761_v52  ;;  %v1103_v52 = vld [vmem:[%s303_s8] ss:$0 sm:$0xff]  ;;  %s952_s8 = scalar_lea.sflag [#allocation3], %s286_s14 }
 0x2a0   : > { %v1417_v55 = vpop.eup %1416  ;;  %1255 = vmatprep.subr.bf16.mxu0 %v1519_v63  ;;  %vm875_vm3 = vcmp.eq.s32.totalorder %v1103_v52, %v870_v0 }
 0x2a1   : > { %v865_v45 = vmul.f32 %v1417_v55, %v1768_v57 }
 0x2a3   : > { %v1419_v60 = vpop.eup %1418  ;;  %1257 = vmatpush3.bf16.msra.mxu0 %v1256_v58  ;;  %v1259_v47 = vpack.c.bf16 %v865_v45, %v864_v40 }
 0x2a4   : > { %v1421_v61 = vpop.eup %1420  ;;  %1258 = vmatprep.subr.bf16.mxu0 %v1519_v63  ;;  %v866_v62 = vmul.f32 %v1419_v60, %v1766_v56 }
 0x2a5   : > { %v867_v44 = vmul.f32 %v1421_v61, %v1773_v59  ;;  %v948_v59 = vld [vmem:[%s1644_s7] sm:$0x3] }
 0x2a7   : > { %1260 = vmatpush3.bf16.msra.mxu0 %v1259_v47  ;;  %v1262_v57 = vpack.c.bf16 %v867_v44, %v866_v62 }
 0x2a8   : > { %1261 = vmatprep.subr.bf16.mxu0 %v1519_v63 }
 0x2ab   : > { %1263 = vmatpush3.bf16.msra.mxu0 %v1262_v57 }
 0x2ae   : > { %1238 = vmatmul.mubr.msk.f32.vlgmr.msra.gmra.mrb[16].mxu0 %vm875_vm3, %v1522_v1 }
 0x381   : > { %v944_v56 = vpop.f32.mrb[16].mxu0 }
 0x382   : > { %v949_v12 = vadd.f32 %v948_v59, %v944_v56  ;;  %v1239_v2 = vpop.f32.mrb[17].mxu0 }
 0x384   : > { %950 = vst [vmem:[%s1644_s7] sm:$0x3] %v949_v12 }
 0x385   : > { %1435 = shalt.err (!%p1432_p8)
}
 0x386   : > { %s1436_s7 = scalar_lea.hbm %s1820_s19, 32  ;;  %s1440_s16 = scalar_lea.hbm %s1882_s6, 64 }
 0x387   : > { %p1437_p10 = scmp.ne.s32.totalorder %s1820_s19, %s1436_s7  ;;  %p1441_p13 = scmp.lt.u32.totalorder %s1820_s19, %s1882_s6 }
 0x388   : > { %p1442_p0 = scmp.lt.u32.totalorder %s1440_s16, %s1436_s7  ;;  %p1444_p2 = scmp.lt.u32.totalorder %s1436_s7, %s1820_s19 }
 0x389   : > { %p1438_p11 = pnand %p1437_p10, %p1608_p3 }
 0x38a   : > { %p1443_p1 = por %p1442_p0, %p1441_p13 }
 0x38b   : > { %p1439_p12 = pneg %p1438_p11 }
 0x38c   : > { %p1445_p4 = por %p1444_p2, %p1443_p1 }
 0x38e   : > { %p1446_p5 = pnand %p1445_p4, %p1439_p12 }
 0x390   : > { %1449 = shalt.err (!%p1446_p5)
}
 0x391   : > { %1264 = dma.vmem_to_hbm [thread:$0]  (%p1608_p3), %s1822_s12, 32, %s1820_s19, %s952_s8  }
 0x392 PF: > { %p1270_p6 = scmp.ge.s32.totalorder %s1516_s28, 2  ;;  %s977_s15 = sand.u32 1, %s1488_s21  }
 0x393   : > { %s978_s18 = scalar_lea.sflag [#allocation3], %s977_s15 }
 0x394   : > { %p1267_p7 = pnand %p1270_p6, %p1618_p9 }
 0x396   : > { %1483 = dma.done.wait (!%p1267_p7), %s978_s18, 32  }
 0x397   : > { %1485 = vsyncadd (!%p1267_p7), %s978_s18, 4294967264  ;;  %s19_s28 = sadd.s32 1, %s1516_s28   ;;  %s1888_s9 = sld [smem:[#allocation5_spill]] }
 0x398   : > { %p16_p8 = scmp.ge.s32.totalorder %s19_s28, 6   ;;  %s1889_s12 = sld [smem:[#allocation6_spill]] }
 0x399   : > { %s1890_s21 = smov %s1492_s22  ;;  %s1891_s22 = smov %s1496_s23 }
 0x39a   : > { %s1892_s23 = smov %s1626_s13  ;;  %s1893_s24 = smov %s1508_s26 }
 0x39b   : > { %s1894_s25 = smov %s1512_s27  ;;  %18 = sbr.rel (!%p16_p8) target bundleno = 5 (0x5), region = 86 }
 0x39d   : > { %s1895_s26 = smov %s1888_s9 }
 0x39e   : > { %s1896_s27 = smov %s1889_s12 }
 0x3a2   :  { %983 = vsyncpa [#allocation3], 1 }
 0x3a3   :  { %985 = vsyncpa [#allocation3 + $0x1], 1 }

</bundles_post_ra>
